<compile_context>
chip_gen: v7x
topology: tpu7x:2x2x1
jax: 0.10.0
libtpu: 0.0.40
codegen_flags: <defaults>
</compile_context>

<pallas_src>
import functools

import jax
import jax.numpy as jnp
from jax import lax
from jax.experimental import pallas as pl
from jax.experimental.pallas import tpu as pltpu


def _softplus(x):
    # Numerically-stable softplus built from basic VPU/EUP ops.
    return jnp.maximum(x, 0.0) + jnp.log(1.0 + jnp.exp(-jnp.abs(x)))


def _fused_dim_kernel(x1_ref, x2p_ref, x2n_ref, w0a_ref, w0b_ref, w1_ref,
                      bvec_ref, b2_ref, out_ref, accp_ref, accn_ref, *, L, tl):
    """One (batch n, lane-tile i) grid step of the fused pos/neg discriminator
    + softplus partial reduction.  Channels-first tiles: x (C, tl) bf16."""
    i = pl.program_id(1)

    @pl.when(i == 0)
    def _():
        accp_ref[...] = jnp.zeros_like(accp_ref)
        accn_ref[...] = jnp.zeros_like(accn_ref)

    b0 = bvec_ref[:, 0:1]          # (hid, 1) f32
    b1 = bvec_ref[:, 1:2]          # (hid, 1) f32
    w2 = bvec_ref[:, 2:3]          # (hid, 1) f32
    b2 = b2_ref[0, 0]              # scalar f32 (SMEM)

    # Layer 0 (split-K): shared W0a@x1 computed once, reused by both branches.
    shared = jnp.dot(w0a_ref[...], x1_ref[...],
                     preferred_element_type=jnp.float32)                  # (hid, tl) f32
    h_pos = jnp.maximum(
        shared + jnp.dot(w0b_ref[...], x2p_ref[...],
                         preferred_element_type=jnp.float32) + b0, 0.0)
    h_neg = jnp.maximum(
        shared + jnp.dot(w0b_ref[...], x2n_ref[...],
                         preferred_element_type=jnp.float32) + b0, 0.0)

    # Layer 1: one MXU dot on the lane-stacked [h_pos | h_neg] operand.
    h = jnp.concatenate([h_pos, h_neg], axis=1).astype(jnp.bfloat16)      # (hid, 2*tl)
    h1 = jnp.dot(w1_ref[...], h, preferred_element_type=jnp.float32) + b1
    h1 = jnp.maximum(h1, 0.0)                                             # (hid, 2*tl) f32

    # Layer 2: 64 -> 1 kept off the MXU (VPU multiply + sublane reduce).
    o = jnp.sum(h1 * w2, axis=0, keepdims=True) + b2                      # (1, 2*tl) f32
    o_pos = o[:, :tl]
    o_neg = o[:, tl:]

    # softplus partials, masking lanes past L (padded remainder tile).
    lane = lax.broadcasted_iota(jnp.int32, (1, tl), 1)
    valid = (i * tl + lane) < L
    sp_pos = jnp.where(valid, _softplus(-o_pos), 0.0)
    sp_neg = jnp.where(valid, _softplus(o_neg), 0.0)

    accp_ref[...] += sp_pos
    accn_ref[...] += sp_neg

    @pl.when(i == pl.num_programs(1) - 1)
    def _():
        pos_tot = jnp.sum(accp_ref[...], axis=1, keepdims=True)           # (1, 1)
        neg_tot = jnp.sum(accn_ref[...], axis=1, keepdims=True)           # (1, 1)
        totals = jnp.concatenate([pos_tot, neg_tot], axis=0)              # (2, 1)
        out_ref[...] = jnp.broadcast_to(totals, out_ref.shape)


def deep_infomax_loss(proto_label_pos, proto_label_neg, proto_unlabel_pos,
                      params, *, tl=4096):
    """DeepInfoMaxLoss.forward with the 'conv' GlobalDiscriminatorConv.
    LOSS = Em - Ej = mean(softplus(d_neg)) + mean(softplus(-d_pos))."""
    # TODO(synk): only the 'conv' GlobalDiscriminatorConv variant is kernelized;
    # the 'concat' / 'dot' discriminator variants are not implemented here.
    w0a, w0b, b0, w1, b1, w2, b2 = params

    x1 = proto_unlabel_pos               # shared operand of both branches
    x2p = proto_label_pos
    x2n = proto_label_neg
    N, C1, H, W = x1.shape
    C2 = x2p.shape[1]
    hid = w1.shape[0]
    L = H * W

    # NCHW is channel-major per image -> (N, C, L) is a free reshape; deliver
    # inputs as bf16 so per-tile HBM DMA bytes are halved.
    x1f = x1.reshape(N, C1, L).astype(jnp.bfloat16)
    x2pf = x2p.reshape(N, C2, L).astype(jnp.bfloat16)
    x2nf = x2n.reshape(N, C2, L).astype(jnp.bfloat16)

    w0a_bf = w0a.astype(jnp.bfloat16)
    w0b_bf = w0b.astype(jnp.bfloat16)
    w1_bf = w1.astype(jnp.bfloat16)
    bvec = jnp.concatenate([b0, b1, w2], axis=1)        # (hid, 3) f32

    # Lane tile: full spatial extent when small, else a multiple of 128 lanes.
    # Kept <= ~4K lanes so the (64, 2*tl) f32 intermediates comfortably fit the
    # 32 MiB scoped VMEM budget (v7x has only 64 MiB physical VMEM).
    if L <= tl:
        tl = L
    else:
        tl = max(128, (tl // 128) * 128)
    grid = (N, pl.cdiv(L, tl))

    kernel = functools.partial(_fused_dim_kernel, L=L, tl=tl)

    sums = pl.pallas_call(
        kernel,
        out_shape=jax.ShapeDtypeStruct((N, 2, 128), jnp.float32),
        grid_spec=pltpu.PrefetchScalarGridSpec(
            num_scalar_prefetch=0,
            grid=grid,
            in_specs=[
                pl.BlockSpec((None, C1, tl), lambda n, i: (n, 0, i)),   # x1 tile
                pl.BlockSpec((None, C2, tl), lambda n, i: (n, 0, i)),   # x2 pos tile
                pl.BlockSpec((None, C2, tl), lambda n, i: (n, 0, i)),   # x2 neg tile
                pl.BlockSpec((hid, C1), lambda n, i: (0, 0)),           # W0a (out,in)
                pl.BlockSpec((hid, C2), lambda n, i: (0, 0)),           # W0b (out,in)
                pl.BlockSpec((hid, hid), lambda n, i: (0, 0)),          # W1
                pl.BlockSpec((hid, 3), lambda n, i: (0, 0)),            # [b0 | b1 | w2]
                pl.BlockSpec(memory_space=pltpu.MemorySpace.SMEM),      # b2 scalar
            ],
            out_specs=pl.BlockSpec((None, 2, 128), lambda n, i: (n, 0, 0)),
            scratch_shapes=[pltpu.VMEM((1, tl), jnp.float32),   # softplus(-d_pos) acc
                            pltpu.VMEM((1, tl), jnp.float32)],  # softplus(+d_neg) acc
        ),
        compiler_params=pltpu.CompilerParams(
            dimension_semantics=("parallel", "arbitrary"),
            vmem_limit_bytes=32 * 1024 * 1024),
    )(x1f, x2pf, x2nf, w0a_bf, w0b_bf, w1_bf, bvec, b2)

    pos_sum = jnp.sum(sums[:, 0, 0])     # sum softplus(-d_pos)
    neg_sum = jnp.sum(sums[:, 1, 0])     # sum softplus(+d_neg)
    return (pos_sum + neg_sum) / (N * L)


def init_params(key, c1, c2, hidden=64):
    """Conv2d(c1+c2,64,1), Conv2d(64,64,1), Conv2d(64,1,1) weights stored
    channels-first as (out, in) matrices plus (out, 1) biases."""
    sz = c1 + c2
    ks = jax.random.split(key, 6)
    k0 = 1.0 / jnp.sqrt(sz)
    k1 = 1.0 / jnp.sqrt(hidden)
    w0 = jax.random.uniform(ks[0], (hidden, sz), jnp.float32, -k0, k0)
    b0 = jax.random.uniform(ks[1], (hidden, 1), jnp.float32, -k0, k0)
    w1 = jax.random.uniform(ks[2], (hidden, hidden), jnp.float32, -k1, k1)
    b1 = jax.random.uniform(ks[3], (hidden, 1), jnp.float32, -k1, k1)
    w2 = jax.random.uniform(ks[4], (hidden, 1), jnp.float32, -k1, k1)
    b2 = jax.random.uniform(ks[5], (1, 1), jnp.float32, -k1, k1)
    # Split W0 into x1 / x2 halves (concat along channels == split-K matmul,
    # and it lets the fused kernel share the W0a@x1 matmul across branches).
    return (w0[:, :c1], w0[:, c1:], b0, w1, b1, w2, b2)


def _reference_disc(x1, x2, params, *, use_bf16=True):
    """Pure-JAX reference of GlobalDiscriminatorConv (channels-first math)."""
    w0a, w0b, b0, w1, b1, w2, b2 = params
    N, C1, H, W = x1.shape
    C2 = x2.shape[1]
    L = H * W
    x1f = x1.reshape(N, C1, L)
    x2f = x2.reshape(N, C2, L)
    cast = (lambda a: a.astype(jnp.bfloat16)) if use_bf16 else (lambda a: a)
    h = (jnp.einsum('oc,ncl->nol', cast(w0a), cast(x1f),
                    preferred_element_type=jnp.float32)
         + jnp.einsum('oc,ncl->nol', cast(w0b), cast(x2f),
                      preferred_element_type=jnp.float32)
         + b0[None])
    h = jax.nn.relu(h)
    h = jnp.einsum('oc,ncl->nol', cast(w1), cast(h),
                   preferred_element_type=jnp.float32) + b1[None]
    h = jax.nn.relu(h)
    o = jnp.sum(h * w2[None], axis=1, keepdims=True) + b2[0, 0]
    return o.reshape(N, 1, H, W)


def _reference_loss(plp, pln, pup, params, *, use_bf16=True):
    d_pos = _reference_disc(pup, plp, params, use_bf16=use_bf16)
    d_neg = _reference_disc(pup, pln, params, use_bf16=use_bf16)
    ej = -jnp.mean(jax.nn.softplus(-d_pos))
    em = jnp.mean(jax.nn.softplus(d_neg))
    return em - ej


if __name__ == "__main__":
    key = jax.random.PRNGKey(0)
    k1, k2, k3, kp = jax.random.split(key, 4)

    # DeepInfoMaxLoss(type='conv'): GlobalDiscriminatorConv(sz=7+7), hidden=64.
    N, C, H, W = 2, 7, 16, 16
    proto_label_pos = jax.random.normal(k1, (N, C, H, W), jnp.float32)
    proto_label_neg = jax.random.normal(k2, (N, C, H, W), jnp.float32)
    proto_unlabel_pos = jax.random.normal(k3, (N, C, H, W), jnp.float32)
    params = init_params(kp, C, C, hidden=64)

    # Fused Pallas forward (discriminator x2 + softplus/mean) vs JAX references.
    loss = jax.block_until_ready(
        deep_infomax_loss(proto_label_pos, proto_label_neg, proto_unlabel_pos,
                          params))
    loss_ref_bf16 = _reference_loss(proto_label_pos, proto_label_neg,
                                    proto_unlabel_pos, params, use_bf16=True)
    loss_ref_f32 = _reference_loss(proto_label_pos, proto_label_neg,
                                   proto_unlabel_pos, params, use_bf16=False)

    assert loss.shape == ()
    assert jnp.abs(loss - loss_ref_bf16) < 2e-3   # same math (bf16 MXU operands)
    assert jnp.abs(loss - loss_ref_f32) < 5e-2    # loose: bf16 vs full-f32 operands

    print("KERNEL_OK")
</pallas_src>

<mosaic_0001>
module attributes {stable_mosaic.version = 11 : i64} {
  func.func @_fused_dim_kernel(%arg0: i32, %arg1: i32, %arg2: memref<1x7x256xbf16, #tpu.memory_space<vmem>>, %arg3: memref<1x7x256xbf16, #tpu.memory_space<vmem>>, %arg4: memref<1x7x256xbf16, #tpu.memory_space<vmem>>, %arg5: memref<64x7xbf16, #tpu.memory_space<vmem>>, %arg6: memref<64x7xbf16, #tpu.memory_space<vmem>>, %arg7: memref<64x64xbf16, #tpu.memory_space<vmem>>, %arg8: memref<64x3xf32, #tpu.memory_space<vmem>>, %arg9: memref<1x1xf32, #tpu.memory_space<smem>>, %arg10: memref<1x2x128xf32, #tpu.memory_space<vmem>>, %arg11: memref<1x256xf32, #tpu.memory_space<vmem>>, %arg12: memref<1x256xf32, #tpu.memory_space<vmem>>) attributes {dimension_semantics = [#tpu.dimension_semantics<parallel>, #tpu.dimension_semantics<arbitrary>], iteration_bounds = array<i64: 2, 1>, scalar_prefetch = 0 : i64, scratch_operands = 2 : i64, tpu.core_type = #tpu.core_type<tc>, window_params = [{transform_indices = @transform_0, window_bounds = array<i64: 1, 7, 256>}, {transform_indices = @transform_1, window_bounds = array<i64: 1, 7, 256>}, {transform_indices = @transform_2, window_bounds = array<i64: 1, 7, 256>}, {pipeline_mode = #tpu.pipeline_mode<synchronous>, transform_indices = @transform_3, window_bounds = array<i64: 64, 7>}, {pipeline_mode = #tpu.pipeline_mode<synchronous>, transform_indices = @transform_4, window_bounds = array<i64: 64, 7>}, {pipeline_mode = #tpu.pipeline_mode<synchronous>, transform_indices = @transform_5, window_bounds = array<i64: 64, 64>}, {pipeline_mode = #tpu.pipeline_mode<synchronous>, transform_indices = @transform_6, window_bounds = array<i64: 64, 3>}, {transform_indices = @transform_7, window_bounds = array<i64: 1, 1>}, {transform_indices = @transform_8, window_bounds = array<i64: 1, 2, 128>}]} {
    %c0_i32 = arith.constant 0 : i32
    %0 = arith.cmpi eq, %arg1, %c0_i32 : i32
    %1 = arith.extui %0 : i1 to i32
    %c0_i32_0 = arith.constant 0 : i32
    %2 = arith.cmpi ne, %1, %c0_i32_0 : i32
    scf.if %2 {
      %cst_50 = arith.constant 0.000000e+00 : f32
      %86 = vector.broadcast %cst_50 : f32 to vector<1x256xf32>
      %c0_51 = arith.constant 0 : index
      %c0_52 = arith.constant 0 : index
      %87 = vector.load %arg11[%c0_51, %c0_52] : memref<1x256xf32, #tpu.memory_space<vmem>>, vector<1x256xf32>
      tpu.vector_store %arg11[%c0_51, %c0_52], %86 {strides = array<i32>} : memref<1x256xf32, #tpu.memory_space<vmem>>, vector<1x256xf32>,
      %cst_53 = arith.constant 0.000000e+00 : f32
      %88 = vector.broadcast %cst_53 : f32 to vector<1x256xf32>
      %c0_54 = arith.constant 0 : index
      %c0_55 = arith.constant 0 : index
      %89 = vector.load %arg12[%c0_54, %c0_55] : memref<1x256xf32, #tpu.memory_space<vmem>>, vector<1x256xf32>
      tpu.vector_store %arg12[%c0_54, %c0_55], %88 {strides = array<i32>} : memref<1x256xf32, #tpu.memory_space<vmem>>, vector<1x256xf32>,
    } else {
    }
    %c0 = arith.constant 0 : index
    %c0_1 = arith.constant 0 : index
    %3 = vector.load %arg8[%c0, %c0_1] : memref<64x3xf32, #tpu.memory_space<vmem>>, vector<64x1xf32>
    %c0_2 = arith.constant 0 : index
    %c1 = arith.constant 1 : index
    %4 = vector.load %arg8[%c0_2, %c1] : memref<64x3xf32, #tpu.memory_space<vmem>>, vector<64x1xf32>
    %c0_3 = arith.constant 0 : index
    %c2 = arith.constant 2 : index
    %5 = vector.load %arg8[%c0_3, %c2] : memref<64x3xf32, #tpu.memory_space<vmem>>, vector<64x1xf32>
    %c0_4 = arith.constant 0 : index
    %c0_5 = arith.constant 0 : index
    %6 = memref.load %arg9[%c0_4, %c0_5] : memref<1x1xf32, #tpu.memory_space<smem>>
    %c0_6 = arith.constant 0 : index
    %c0_7 = arith.constant 0 : index
    %7 = vector.load %arg5[%c0_6, %c0_7] : memref<64x7xbf16, #tpu.memory_space<vmem>>, vector<64x7xbf16>
    %c0_8 = arith.constant 0 : index
    %c0_9 = arith.constant 0 : index
    %c0_10 = arith.constant 0 : index
    %8 = vector.load %arg2[%c0_8, %c0_9, %c0_10] : memref<1x7x256xbf16, #tpu.memory_space<vmem>>, vector<1x7x256xbf16>
    %9 = vector.shape_cast %8 : vector<1x7x256xbf16> to vector<7x256xbf16>
    %cst = arith.constant dense<0.000000e+00> : vector<64x256xf32>
    %10 = tpu.matmul %7, %9, %cst {dimension_numbers = #tpu.dot_dimension_numbers<[1], [0], [0], [1], [0, 0, 1, 1], [], []>} : vector<64x7xbf16>, vector<7x256xbf16>, vector<64x256xf32> -> vector<64x256xf32>
    %c0_11 = arith.constant 0 : index
    %c0_12 = arith.constant 0 : index
    %11 = vector.load %arg6[%c0_11, %c0_12] : memref<64x7xbf16, #tpu.memory_space<vmem>>, vector<64x7xbf16>
    %c0_13 = arith.constant 0 : index
    %c0_14 = arith.constant 0 : index
    %c0_15 = arith.constant 0 : index
    %12 = vector.load %arg3[%c0_13, %c0_14, %c0_15] : memref<1x7x256xbf16, #tpu.memory_space<vmem>>, vector<1x7x256xbf16>
    %13 = vector.shape_cast %12 : vector<1x7x256xbf16> to vector<7x256xbf16>
    %cst_16 = arith.constant dense<0.000000e+00> : vector<64x256xf32>
    %14 = tpu.matmul %11, %13, %cst_16 {dimension_numbers = #tpu.dot_dimension_numbers<[1], [0], [0], [1], [0, 0, 1, 1], [], []>} : vector<64x7xbf16>, vector<7x256xbf16>, vector<64x256xf32> -> vector<64x256xf32>
    %15 = arith.addf %10, %14 : vector<64x256xf32>
    %16 = vector.broadcast %3 : vector<64x1xf32> to vector<64x256xf32>
    %17 = arith.addf %15, %16 : vector<64x256xf32>
    %cst_17 = arith.constant 0.000000e+00 : f32
    %18 = vector.broadcast %cst_17 : f32 to vector<64x256xf32>
    %19 = arith.maximumf %17, %18 : vector<64x256xf32>
    %c0_18 = arith.constant 0 : index
    %c0_19 = arith.constant 0 : index
    %20 = vector.load %arg6[%c0_18, %c0_19] : memref<64x7xbf16, #tpu.memory_space<vmem>>, vector<64x7xbf16>
    %c0_20 = arith.constant 0 : index
    %c0_21 = arith.constant 0 : index
    %c0_22 = arith.constant 0 : index
    %21 = vector.load %arg4[%c0_20, %c0_21, %c0_22] : memref<1x7x256xbf16, #tpu.memory_space<vmem>>, vector<1x7x256xbf16>
    %22 = vector.shape_cast %21 : vector<1x7x256xbf16> to vector<7x256xbf16>
    %cst_23 = arith.constant dense<0.000000e+00> : vector<64x256xf32>
    %23 = tpu.matmul %20, %22, %cst_23 {dimension_numbers = #tpu.dot_dimension_numbers<[1], [0], [0], [1], [0, 0, 1, 1], [], []>} : vector<64x7xbf16>, vector<7x256xbf16>, vector<64x256xf32> -> vector<64x256xf32>
    %24 = arith.addf %10, %23 : vector<64x256xf32>
    %25 = vector.broadcast %3 : vector<64x1xf32> to vector<64x256xf32>
    %26 = arith.addf %24, %25 : vector<64x256xf32>
    %cst_24 = arith.constant 0.000000e+00 : f32
    %27 = vector.broadcast %cst_24 : f32 to vector<64x256xf32>
    %28 = arith.maximumf %26, %27 : vector<64x256xf32>
    %29 = tpu.concatenate %19, %28 in 1 : vector<64x256xf32>, vector<64x256xf32> -> vector<64x512xf32>
    %30 = arith.truncf %29 : vector<64x512xf32> to vector<64x512xbf16>
    %c0_25 = arith.constant 0 : index
    %c0_26 = arith.constant 0 : index
    %31 = vector.load %arg7[%c0_25, %c0_26] : memref<64x64xbf16, #tpu.memory_space<vmem>>, vector<64x64xbf16>
    %cst_27 = arith.constant dense<0.000000e+00> : vector<64x512xf32>
    %32 = tpu.matmul %31, %30, %cst_27 {dimension_numbers = #tpu.dot_dimension_numbers<[1], [0], [0], [1], [0, 0, 1, 1], [], []>} : vector<64x64xbf16>, vector<64x512xbf16>, vector<64x512xf32> -> vector<64x512xf32>
    %33 = vector.broadcast %4 : vector<64x1xf32> to vector<64x512xf32>
    %34 = arith.addf %32, %33 : vector<64x512xf32>
    %cst_28 = arith.constant 0.000000e+00 : f32
    %35 = vector.broadcast %cst_28 : f32 to vector<64x512xf32>
    %36 = arith.maximumf %34, %35 : vector<64x512xf32>
    %37 = vector.broadcast %5 : vector<64x1xf32> to vector<64x512xf32>
    %38 = arith.mulf %36, %37 : vector<64x512xf32>
    %cst_29 = arith.constant dense<0.000000e+00> : vector<512xf32>
    %39 = vector.multi_reduction <add>, %38, %cst_29 [0] : vector<64x512xf32> to vector<512xf32>
    %40 = vector.shape_cast %39 : vector<512xf32> to vector<1x512xf32>
    %41 = vector.broadcast %6 : f32 to vector<1x512xf32>
    %42 = arith.addf %40, %41 : vector<1x512xf32>
    %43 = vector.extract_strided_slice %42 {offsets = [0, 0], sizes = [1, 256], strides = [1, 1]} : vector<1x512xf32> to vector<1x256xf32>
    %44 = vector.extract_strided_slice %42 {offsets = [0, 256], sizes = [1, 256], strides = [1, 1]} : vector<1x512xf32> to vector<1x256xf32>
    %45 = tpu.iota {dimensions = array<i32: 1>} : vector<1x256xi32>
    %c256_i32 = arith.constant 256 : i32
    %46 = arith.muli %arg1, %c256_i32 : i32
    %47 = vector.broadcast %46 : i32 to vector<1x256xi32>
    %48 = arith.addi %47, %45 : vector<1x256xi32>
    %c256_i32_30 = arith.constant 256 : i32
    %49 = vector.broadcast %c256_i32_30 : i32 to vector<1x256xi32>
    %50 = arith.cmpi slt, %48, %49 : vector<1x256xi32>
    %cst_31 = arith.constant 0.000000e+00 : f32
    %51 = vector.broadcast %cst_31 : f32 to vector<1x256xf32>
    %52 = arith.subf %51, %43 : vector<1x256xf32>
    %cst_32 = arith.constant 0.000000e+00 : f32
    %53 = vector.broadcast %cst_32 : f32 to vector<1x256xf32>
    %54 = arith.maximumf %52, %53 : vector<1x256xf32>
    %55 = math.absf %52 : vector<1x256xf32>
    %cst_33 = arith.constant 0.000000e+00 : f32
    %56 = vector.broadcast %cst_33 : f32 to vector<1x256xf32>
    %57 = arith.subf %56, %55 : vector<1x256xf32>
    %58 = math.exp %57 : vector<1x256xf32>
    %cst_34 = arith.constant 1.000000e+00 : f32
    %59 = vector.broadcast %cst_34 : f32 to vector<1x256xf32>
    %60 = arith.addf %59, %58 : vector<1x256xf32>
    %61 = math.log %60 : vector<1x256xf32>
    %62 = arith.addf %54, %61 : vector<1x256xf32>
    %cst_35 = arith.constant 0.000000e+00 : f32
    %63 = vector.broadcast %cst_35 : f32 to vector<1x256xf32>
    %64 = arith.select %50, %62, %63 : vector<1x256xi1>, vector<1x256xf32>
    %cst_36 = arith.constant 0.000000e+00 : f32
    %65 = vector.broadcast %cst_36 : f32 to vector<1x256xf32>
    %66 = arith.maximumf %44, %65 : vector<1x256xf32>
    %67 = math.absf %44 : vector<1x256xf32>
    %cst_37 = arith.constant 0.000000e+00 : f32
    %68 = vector.broadcast %cst_37 : f32 to vector<1x256xf32>
    %69 = arith.subf %68, %67 : vector<1x256xf32>
    %70 = math.exp %69 : vector<1x256xf32>
    %cst_38 = arith.constant 1.000000e+00 : f32
    %71 = vector.broadcast %cst_38 : f32 to vector<1x256xf32>
    %72 = arith.addf %71, %70 : vector<1x256xf32>
    %73 = math.log %72 : vector<1x256xf32>
    %74 = arith.addf %66, %73 : vector<1x256xf32>
    %cst_39 = arith.constant 0.000000e+00 : f32
    %75 = vector.broadcast %cst_39 : f32 to vector<1x256xf32>
    %76 = arith.select %50, %74, %75 : vector<1x256xi1>, vector<1x256xf32>
    %c0_40 = arith.constant 0 : index
    %c0_41 = arith.constant 0 : index
    %77 = vector.load %arg11[%c0_40, %c0_41] : memref<1x256xf32, #tpu.memory_space<vmem>>, vector<1x256xf32>
    %78 = arith.addf %77, %64 : vector<1x256xf32>
    %c0_42 = arith.constant 0 : index
    %c0_43 = arith.constant 0 : index
    %79 = vector.load %arg11[%c0_42, %c0_43] : memref<1x256xf32, #tpu.memory_space<vmem>>, vector<1x256xf32>
    tpu.vector_store %arg11[%c0_42, %c0_43], %78 {strides = array<i32>} : memref<1x256xf32, #tpu.memory_space<vmem>>, vector<1x256xf32>,
    %c0_44 = arith.constant 0 : index
    %c0_45 = arith.constant 0 : index
    %80 = vector.load %arg12[%c0_44, %c0_45] : memref<1x256xf32, #tpu.memory_space<vmem>>, vector<1x256xf32>
    %81 = arith.addf %80, %76 : vector<1x256xf32>
    %c0_46 = arith.constant 0 : index
    %c0_47 = arith.constant 0 : index
    %82 = vector.load %arg12[%c0_46, %c0_47] : memref<1x256xf32, #tpu.memory_space<vmem>>, vector<1x256xf32>
    tpu.vector_store %arg12[%c0_46, %c0_47], %81 {strides = array<i32>} : memref<1x256xf32, #tpu.memory_space<vmem>>, vector<1x256xf32>,
    %c0_i32_48 = arith.constant 0 : i32
    %83 = arith.cmpi eq, %arg1, %c0_i32_48 : i32
    %84 = arith.extui %83 : i1 to i32
    %c0_i32_49 = arith.constant 0 : i32
    %85 = arith.cmpi ne, %84, %c0_i32_49 : i32
    scf.if %85 {
      %c0_50 = arith.constant 0 : index
      %c0_51 = arith.constant 0 : index
      %86 = vector.load %arg11[%c0_50, %c0_51] : memref<1x256xf32, #tpu.memory_space<vmem>>, vector<1x256xf32>
      %cst_52 = arith.constant dense<0.000000e+00> : vector<1xf32>
      %87 = vector.multi_reduction <add>, %86, %cst_52 [1] : vector<1x256xf32> to vector<1xf32>
      %88 = vector.shape_cast %87 : vector<1xf32> to vector<1x1xf32>
      %c0_53 = arith.constant 0 : index
      %c0_54 = arith.constant 0 : index
      %89 = vector.load %arg12[%c0_53, %c0_54] : memref<1x256xf32, #tpu.memory_space<vmem>>, vector<1x256xf32>
      %cst_55 = arith.constant dense<0.000000e+00> : vector<1xf32>
      %90 = vector.multi_reduction <add>, %89, %cst_55 [1] : vector<1x256xf32> to vector<1xf32>
      %91 = vector.shape_cast %90 : vector<1xf32> to vector<1x1xf32>
      %92 = tpu.concatenate %88, %91 in 0 : vector<1x1xf32>, vector<1x1xf32> -> vector<2x1xf32>
      %93 = vector.shape_cast %92 : vector<2x1xf32> to vector<2x1xf32>
      %94 = vector.broadcast %93 : vector<2x1xf32> to vector<2x128xf32>
      %c0_56 = arith.constant 0 : index
      %c0_57 = arith.constant 0 : index
      %c0_58 = arith.constant 0 : index
      %95 = vector.load %arg10[%c0_56, %c0_57, %c0_58] : memref<1x2x128xf32, #tpu.memory_space<vmem>>, vector<1x2x128xf32>
      %96 = vector.shape_cast %95 : vector<1x2x128xf32> to vector<2x128xf32>
      %97 = vector.shape_cast %94 : vector<2x128xf32> to vector<1x2x128xf32>
      tpu.vector_store %arg10[%c0_56, %c0_57, %c0_58], %97 {strides = array<i32>} : memref<1x2x128xf32, #tpu.memory_space<vmem>>, vector<1x2x128xf32>,
    } else {
    }
    return
  }
  func.func @transform_0(%arg0: i32, %arg1: i32) -> (i32, i32, i32) {
    %c0_i32 = arith.constant 0 : i32
    %c0_i32_0 = arith.constant 0 : i32
    return %arg0, %c0_i32, %arg1 : i32, i32, i32
  }
  func.func @transform_1(%arg0: i32, %arg1: i32) -> (i32, i32, i32) {
    %c0_i32 = arith.constant 0 : i32
    %c0_i32_0 = arith.constant 0 : i32
    return %arg0, %c0_i32, %arg1 : i32, i32, i32
  }
  func.func @transform_2(%arg0: i32, %arg1: i32) -> (i32, i32, i32) {
    %c0_i32 = arith.constant 0 : i32
    %c0_i32_0 = arith.constant 0 : i32
    return %arg0, %c0_i32, %arg1 : i32, i32, i32
  }
  func.func @transform_3(%arg0: i32, %arg1: i32) -> (i32, i32) {
    %c0_i32 = arith.constant 0 : i32
    %c0_i32_0 = arith.constant 0 : i32
    %c0_i32_1 = arith.constant 0 : i32
    return %c0_i32, %c0_i32_0 : i32, i32
  }
  func.func @transform_4(%arg0: i32, %arg1: i32) -> (i32, i32) {
    %c0_i32 = arith.constant 0 : i32
    %c0_i32_0 = arith.constant 0 : i32
    %c0_i32_1 = arith.constant 0 : i32
    return %c0_i32, %c0_i32_0 : i32, i32
  }
  func.func @transform_5(%arg0: i32, %arg1: i32) -> (i32, i32) {
    %c0_i32 = arith.constant 0 : i32
    %c0_i32_0 = arith.constant 0 : i32
    %c0_i32_1 = arith.constant 0 : i32
    return %c0_i32, %c0_i32_0 : i32, i32
  }
  func.func @transform_6(%arg0: i32, %arg1: i32) -> (i32, i32) {
    %c0_i32 = arith.constant 0 : i32
    %c0_i32_0 = arith.constant 0 : i32
    %c0_i32_1 = arith.constant 0 : i32
    return %c0_i32, %c0_i32_0 : i32, i32
  }
  func.func @transform_7(%arg0: i32, %arg1: i32) -> (i32, i32) {
    %c0_i32 = arith.constant 0 : i32
    %c0_i32_0 = arith.constant 0 : i32
    %c0_i32_1 = arith.constant 0 : i32
    return %c0_i32, %c0_i32_0 : i32, i32
  }
  func.func @transform_8(%arg0: i32, %arg1: i32) -> (i32, i32, i32) {
    %c0_i32 = arith.constant 0 : i32
    %c0_i32_0 = arith.constant 0 : i32
    %c0_i32_1 = arith.constant 0 : i32
    return %arg0, %c0_i32, %c0_i32_0 : i32, i32, i32
  }
}

</mosaic_0001>

<bundles_post_ra>
// kernel: tpu_custom_call.1
= control target key start
LH: loop header
LB: loop body
LE: loop exit
PB: predicated region body
PF: predicated region fallthrough
CT: control target
= control target key end

     0   :  { %s2176_s0 = inlined_call_operand.vmem [shape: bf16[2,7,256], index: 0, kind: input, shape index: {}]   ;;  %s2177_s1 = inlined_call_operand.vmem [shape: bf16[2,7,256], index: 1, kind: input, shape index: {}]   ;;  %s2178_s2 = inlined_call_operand.vmem [shape: bf16[2,7,256], index: 2, kind: input, shape index: {}]   ;;  %s2179_s3 = inlined_call_operand.vmem [shape: bf16[64,7], index: 3, kind: input, shape index: {}]   ;;  %s2180_s4 = inlined_call_operand.vmem [shape: bf16[64,7], index: 4, kind: input, shape index: {}]   ;;  %s2181_s5 = inlined_call_operand.vmem [shape: bf16[64,64], index: 5, kind: input, shape index: {}]   ;;  %s2182_s6 = inlined_call_operand.vmem [shape: f32[64,3], index: 6, kind: input, shape index: {}]   ;;  %s2183_s7 = inlined_call_operand.<no memory space> [shape: f32[1,1], index: 7, kind: input, shape index: {}]   ;;  %s2184_s8 = inlined_call_operand.hbm [shape: f32[2,2,128], index: 8, kind: output, shape index: {}]  }
   0x1   :  { %13 = sst [smem:[#allocation4]] %s2183_s7 }
   0x2   :  { %14 = vsyncpa [#allocation6], 0 }
   0x3   :  { %16 = vsyncpa [#allocation6 + $0x1], 0  ;;  %s1858_s29 = smov 0   ;;  %s1860_s30 = smov 0  }
   0x4   :  { %s1862_s9 = smov 0   ;;  %s1864_s10 = smov 0  }
   0x5   :  { %s1866_s11 = smov 0   ;;  %s1868_s12 = smov 0  }
   0x6 LB: > { %s1557_s7 = sadd.s32 4294967295, %s1801_s12   ;;  %s1558_s13 = sadd.s32 4294967294, %s1801_s12   ;;  %s1801_s12 = sphi %s1868_s12, %s22_s12   ;;  %s1797_s11 = sphi %s1866_s11, %s2193_s11   ;;  %s1793_s10 = sphi %s1864_s10, %s2192_s10   ;;  %s1789_s9 = sphi %s1862_s9, %s2191_s9   ;;  %s1785_s30 = sphi %s1860_s30, %s2190_s30   ;;  %s1781_s29 = sphi %s1858_s29, %s2189_s29  }
   0x7   : > { %s34_s14 = sadd.s32 1, %s1797_s11  ;;  %s230_s15 = sadd.s32 1, %s1789_s9 }
   0x8   : > { %p36_p0 = scmp.ge.s32.totalorder %s34_s14, 2  ;;  %p240_p1 = scmp.ne.s32.totalorder %s1789_s9, %s1785_s30 }
   0x9   : > { %p241_p2 = scmp.eq.s32.totalorder %s1557_s7, 1  ;;  %p246_p3 = scmp.ne.s32.totalorder %s1785_s30, %s1781_s29 }
   0xa   : > { %s2195_s14 = smov (%p36_p0, %s34_s14), 0  ;;  %p247_p5 = scmp.eq.s32.totalorder %s1558_s13, 1 }
   0xb   : > { %p1898_p4 = por %p241_p2, %p240_p1  ;;  %s227_s17 = ssub.s32 %s1797_s11, %s2195_s14 }
   0xc   : > { %p1561_p6 = scmp.ge.s32.totalorder %s1801_s12, 1  ;;  %p228_p7 = scmp.eq.s32.totalorder %s227_s17, 0 }
   0xd   : > { %p1905_p8 = por %p247_p5, %p246_p3  ;;  %p319_p9 = scmp.lt.s32.totalorder %s1801_s12, 3 }
   0xe   : > { %s1911_s19 = scalar_select %p228_p7, %s1789_s9, %s230_s15  }
   0xf   : > { %p320_p10 = pnand %p1561_p6, %p319_p9 }
  0x10   : > { %p376_p11 = scmp.lt.s32.totalorder (!%p320_p10), %s1793_s10, 1  ;;  %vm472_vm0 = vcmask (!%p320_p10), 1042432   ;;  %v1803_v0 = vmov (!%p320_p10), 0   ;;  %vm473_vm1 = vcmask (!%p320_p10), 1043456   ;;  %v1804_v1 = vmov (!%p320_p10), 65535   ;;  %v1691_v16 = vld [vmem:[%s2179_s3] sm:$0xff] (!%p320_p10)  }
  0x11   : > { %323 = sbr.rel (%p320_p10) target bundleno = 907 (0x38b), region = 52  ;;  %514 = vmatprep.mubr.bf16.mxu0 (!%p320_p10), %v1803_v0  ;;  %534 = vmatprep.mubr.bf16.mxu1 (!%p320_p10), %v1803_v0  ;;  %v474_v2 = vsel (!%p320_p10), %vm472_vm0, 4294967295, %v1804_v1  ;;  %v1692_v18 = vld [vmem:[%s2179_s3 + $0x10] sm:$0xff] (!%p320_p10)   ;;  %v1937_v19 = vld [vmem:[%s2182_s6] sm:$0xff] (!%p320_p10)  ;;  %vm459_vm2 = vcmask (!%p320_p10), 56320   ;;  %v417_v23 = vld [vmem:[%s2182_s6 + $0x8] sm:$0xff] (!%p320_p10) }
  0x12   : > { %1677 = vset.pattern.permute.xlu0 (!%p320_p10), %v1803_v0  ;;  %1678 = vset.pattern.permute.xlu1 (!%p320_p10), %v1803_v0  ;;  %v475_v4 = vsel (!%p320_p10), %vm473_vm1, %v474_v2, 0  ;;  %v1942_v20 = vld [vmem:[%s2182_s6 + $0x10] sm:$0xff] (!%p320_p10)  ;;  %v419_v24 = vld [vmem:[%s2182_s6 + $0x18] sm:$0xff] (!%p320_p10)  ;;  %v1697_v25 = vld [vmem:[%s2179_s3 + $0x8] sm:$0xff] (!%p320_p10)   ;;  %v1805_v35 = vmov (!%p320_p10), 1   ;;  %v1806_v36 = vmov (!%p320_p10), 2  }
  0x13   : > { %698 = vperm.xlu0 (!%p320_p10), %1677, %v1937_v19   ;;  %708 = vperm.xlu1 (!%p320_p10), %1678, %v1942_v20   ;;  %v1698_v26 = vld [vmem:[%s2179_s3 + $0x18] sm:$0xff] (!%p320_p10)   ;;  %v420_v27 = vld [vmem:[%s2182_s6 + $0x20] sm:$0xff] (!%p320_p10)  ;;  %v421_v28 = vld [vmem:[%s2182_s6 + $0x28] sm:$0xff] (!%p320_p10)  ;;  %vm977_vm3 = vcmask (!%p320_p10), 523264   ;;  %s424_s17 = sld [smem:[#allocation4]] (!%p320_p10)  ;;  %vm1401_vm5 = vcmask (!%p320_p10), 1040384  }
  0x14   : > { %v422_v29 = vld [vmem:[%s2182_s6 + $0x30] sm:$0xff] (!%p320_p10)  ;;  %v423_v30 = vld [vmem:[%s2182_s6 + $0x38] sm:$0xff] (!%p320_p10)  ;;  %v1699_v31 = vld [vmem:[%s2180_s4] sm:$0xff] (!%p320_p10)  }
  0x15   : > { %v1700_v32 = vld [vmem:[%s2180_s4 + $0x8] sm:$0xff] (!%p320_p10)   ;;  %v1701_v33 = vld [vmem:[%s2180_s4 + $0x10] sm:$0xff] (!%p320_p10)   ;;  %v1702_v34 = vld [vmem:[%s2180_s4 + $0x18] sm:$0xff] (!%p320_p10)  }
  0x17   : > { %703 = vperm.xlu0 (!%p320_p10), %1677, %v417_v23   ;;  %713 = vperm.xlu1 (!%p320_p10), %1678, %v419_v24  }
  0x18   : > { %s377_s20 = scalar_select %p376_p11, %s1793_s10, 1 }
  0x1a   : > { %s1611_s21 = sshll.u32 %s377_s20, 3  ;;  %s372_s20 = sand.u32 1, %s1785_s30  }
  0x1b   : > { %s383_s24 = scalar_lea.vmem %s2176_s0, %s1611_s21  ;;  %s393_s27 = scalar_lea.vmem %s2177_s1, %s1611_s21  ;;  %718 = vperm.xlu0 %1677, %v420_v27   ;;  %723 = vperm.xlu1 %1678, %v421_v28  }
  0x1c   : > { %v433_v3 = vld [vmem:[%s383_s24] sm:$0xff]  ;;  %s403_s13 = scalar_lea.vmem %s2178_s2, %s1611_s21  ;;  %s1562_s22 = sshll.u32 %s372_s20, 1 }
  0x1d   : > { %v563_v5 = vld [vmem:[%s393_s27] sm:$0xff]  ;;  %v1574_v6 = vcombine.high %v433_v3, %v433_v3  ;;  %v1573_v7 = vcombine.low %v433_v3, %v433_v3  ;;  %s374_s21 = scalar_lea.vmem [#allocation5], %s1562_s22  ;;  %s1608_s24 = sshll.u32 %s1793_s10, 5 }
  0x1e   : > { %v1584_v8 = vcombine.high %v563_v5, %v563_v5  ;;  %v768_v9 = vld [vmem:[%s403_s13] sm:$0xff]  ;;  %v1583_v10 = vcombine.low %v563_v5, %v563_v5  ;;  %s1448_s23 = sshll.u32 %s374_s21, 4  ;;  %s2131_s27 = scalar_lea.hbm %s2184_s8, %s1608_s24  ;;  %s2126_s23 = int_to_ptr.vmem [resolvable:$true] %s1448_s23 }
  0x1f   : > { %v1589_v11 = vcombine.low %v768_v9, %v768_v9  ;;  %v1590_v12 = vcombine.high %v768_v9, %v768_v9  ;;  %v480_v13 = vand.u32 %v1574_v6, %v475_v4  ;;  %v477_v14 = vand.u32 %v1573_v7, %v475_v4  ;;  %728 = vperm.xlu0 %1677, %v422_v29   ;;  %s1435_s28 = scalar_lea.sflag [#allocation6], %s372_s20  ;;  %s1723_s7 = scalar_lea.vmem %s2126_s23, 32 }
  0x20   : > { %v605_v15 = vand.u32 %v1584_v8, %v475_v4  ;;  %v602_v21 = vand.u32 %v1583_v10, %v475_v4  ;;  %733 = vperm.xlu1 %1678, %v423_v30   ;;  %p1724_p12 = scmp.ne.s32.totalorder %s2126_s23, %s1723_s7  ;;  %s1809_s13 = smov [#allocation5]  }
  0x21   : > { %v778_v17 = vand.u32 %v1590_v12, %v475_v4  ;;  %482 = vmatprep.subr.bf16.mxu0 %v480_v13  ;;  %1614 = vmatprep.subr.bf16.mxu1 %v480_v13  ;;  %v775_v22 = vand.u32 %v1589_v11, %v475_v4  ;;  %s1727_s10 = sshll.u32 %s1809_s13, 4  ;;  %s1728_s10 = int_to_ptr.vmem [resolvable:$false] %s1727_s10 }
  0x22   : > { %483 = vmatpush1.bf16.msra.mxu0 %v477_v14  ;;  %1615 = vmatpush1.bf16.msra.mxu1 %v477_v14  ;;  %p1725_p13 = pnand %p1724_p12, %p1898_p4  ;;  %s1729_s15 = scalar_lea.vmem %s1728_s10, 64 }
  0x23   : > { %607 = vmatprep.subr.bf16.mxu1 %v605_v15  ;;  %780 = vmatprep.subr.bf16.mxu0 %v778_v17  ;;  %p1730_p1 = scmp.lt.s32.totalorder %s2126_s23, %s1728_s10  ;;  %p1731_p2 = scmp.lt.s32.totalorder %s1729_s15, %s1723_s7 }
  0x24   : > { %1679 = vset.pattern.permute.xlu1 %v1805_v35  ;;  %1681 = vset.pattern.permute.xlu0 %v1806_v36  ;;  %p1726_p0 = pneg %p1725_p13 }
  0x25   : > { %1575 = vmatmul.mubr.msk.bf16.vlgmr.msra.gmra.mrb[0].mxu0 %vm459_vm2, %v1691_v16  ;;  %1577 = vmatmul.mubr.msk.bf16.vlgmr.msra.gmra.mrb[0].mxu1 %vm459_vm2, %v1692_v18  ;;  %p1732_p3 = por %p1731_p2, %p1730_p1 }
  0x26   : > { %608 = vmatpush1.bf16.msra.mxu1 %v602_v21  ;;  %781 = vmatpush1.bf16.msra.mxu0 %v775_v22 }
  0x27   : > { %524 = vmatprep.mubr.bf16.mxu0 %v1803_v0  ;;  %544 = vmatprep.mubr.bf16.mxu1 %v1803_v0  ;;  %p1733_p5 = pnand %p1732_p3, %p1726_p0 }
  0x28   : > { %930 = vperm.xlu1 %1679, %v417_v23   ;;  %1173 = vperm.xlu0 %1681, %v417_v23  }
  0x2c   : > { %934 = vperm.xlu1 %1679, %v1942_v20   ;;  %1682 = vset.pattern.permute.xlu0 %v1805_v35 }
  0x2d   : > { %1576 = vmatmul.mubr.msk.bf16.gmra.mrb[4].mxu0 %vm459_vm2, %v1697_v25  ;;  %1578 = vmatmul.mubr.msk.bf16.gmra.mrb[4].mxu1 %vm459_vm2, %v1698_v26 }
  0x2e   : > { %639 = vmatprep.mubr.bf16.mxu1 %v1803_v0  ;;  %812 = vmatprep.mubr.bf16.mxu0 %v1803_v0 }
  0x2f   : > { %926 = vperm.xlu0 %1682, %v1937_v19  }
  0x30   : > { %1680 = vset.pattern.permute.xlu1 %v1806_v36 }
  0x31   : > { %1169 = vperm.xlu1 %1680, %v1937_v19  }
  0x33   : > { %938 = vperm.xlu0 %1682, %v419_v24  }
  0x35   : > { %1585 = vmatmul.mubr.msk.bf16.vlgmr.msra.gmra.mrb[8].mxu1 %vm459_vm2, %v1699_v31  ;;  %1591 = vmatmul.mubr.msk.bf16.vlgmr.msra.gmra.mrb[8].mxu0 %vm459_vm2, %v1699_v31 }
  0x36   : > { %649 = vmatprep.mubr.bf16.mxu1 %v1803_v0  ;;  %822 = vmatprep.mubr.bf16.mxu0 %v1803_v0 }
  0x37   : > { %1683 = vset.pattern.permute.xlu1 %v1805_v35  ;;  %946 = vperm.xlu0 %1682, %v421_v28  }
  0x38   : > { %942 = vperm.xlu1 %1683, %v420_v27  }
  0x3b   : > { %1686 = vset.pattern.permute.xlu0 %v1806_v36 }
  0x3c   : > { %1684 = vset.pattern.permute.xlu1 %v1806_v36  ;;  %1185 = vperm.xlu0 %1686, %v420_v27  }
  0x3d   : > { %1586 = vmatmul.mubr.msk.bf16.gmra.mrb[12].mxu1 %vm459_vm2, %v1700_v32  ;;  %1592 = vmatmul.mubr.msk.bf16.gmra.mrb[12].mxu0 %vm459_vm2, %v1700_v32 }
  0x3e   : > { %659 = vmatprep.mubr.bf16.mxu1 %v1803_v0  ;;  %832 = vmatprep.mubr.bf16.mxu0 %v1803_v0 }
  0x3f   : > { %1177 = vperm.xlu1 %1684, %v1942_v20  }
  0x40   : > { %1193 = vperm.xlu0 %1686, %v422_v29  }
  0x43   : > { %1181 = vperm.xlu1 %1684, %v419_v24  }
  0x44   : > { %1688 = vset.pattern.permute.xlu0 %v1803_v0 }
  0x45   : > { %1587 = vmatmul.mubr.msk.bf16.gmra.mrb[16].mxu1 %vm459_vm2, %v1701_v33  ;;  %1593 = vmatmul.mubr.msk.bf16.gmra.mrb[16].mxu0 %vm459_vm2, %v1701_v33 }
  0x46   : > { %669 = vmatprep.mubr.bf16.mxu1 %v1803_v0  ;;  %842 = vmatprep.mubr.bf16.mxu0 %v1803_v0 }
  0x47   : > { %1685 = vset.pattern.permute.xlu1 %v1805_v35 }
  0x48   : > { %950 = vperm.xlu1 %1685, %v422_v29  }
  0x4c   : > { %954 = vperm.xlu1 %1685, %v423_v30  }
  0x4d   : > { %1588 = vmatmul.mubr.msk.bf16.gmra.mrb[20].mxu1 %vm459_vm2, %v1702_v34  ;;  %1594 = vmatmul.mubr.msk.bf16.gmra.mrb[20].mxu0 %vm459_vm2, %v1702_v34 }
  0x4e   : > { %1022 = vmatprep.mubr.bf16.mxu1 %v1803_v0  ;;  %1095 = vmatprep.mubr.bf16.mxu0 %v1803_v0 }
  0x50   : > { %1687 = vset.pattern.permute.xlu1 %v1806_v36 }
  0x51   : > { %1189 = vperm.xlu1 %1687, %v421_v28  }
  0x55   : > { %1197 = vperm.xlu1 %1687, %v423_v30  }
  0x92   : > { %v699_v45 = vpop.permute.xlu0 %698  ;;  %v709_v14 = vpop.permute.xlu1 %708 }
  0x96   : > { %v704_v54 = vpop.permute.xlu0 %703 }
  0xf8   : > { %v516_v37 = vpop.f32.mrb[0].mxu0  ;;  %v2011_v38 = vpop.f32.mrb[0].mxu1 }
  0xf9   : > { %v518_v39 = vpop.f32.mrb[1].mxu0  ;;  %v2013_v40 = vpop.f32.mrb[1].mxu1 }
  0xfa   : > { %v520_v41 = vpop.f32.mrb[2].mxu0  ;;  %v2015_v42 = vpop.f32.mrb[2].mxu1 }
  0xfb   : > { %v522_v43 = vpop.f32.mrb[3].mxu0  ;;  %v2017_v44 = vpop.f32.mrb[3].mxu1 }
 0x100   : > { %v526_v46 = vpop.f32.mrb[4].mxu0  ;;  %v2019_v47 = vpop.f32.mrb[4].mxu1 }
 0x101   : > { %v528_v48 = vpop.f32.mrb[5].mxu0  ;;  %v2021_v49 = vpop.f32.mrb[5].mxu1 }
 0x102   : > { %v530_v50 = vpop.f32.mrb[6].mxu0  ;;  %v2023_v51 = vpop.f32.mrb[6].mxu1 }
 0x103   : > { %v532_v52 = vpop.f32.mrb[7].mxu0  ;;  %v2025_v53 = vpop.f32.mrb[7].mxu1 }
 0x108   : > { %v641_v55 = vpop.f32.mrb[8].mxu1  ;;  %v814_v56 = vpop.f32.mrb[8].mxu0 }
 0x109   : > { %v680_v57 = vadd.f32 %v641_v55, %v516_v37  ;;  %v853_v58 = vadd.f32 %v814_v56, %v516_v37  ;;  %v643_v59 = vpop.f32.mrb[9].mxu1  ;;  %v816_v60 = vpop.f32.mrb[9].mxu0 }
 0x10a   : > { %v681_v61 = vadd.f32 %v643_v59, %v518_v39  ;;  %v854_v62 = vadd.f32 %v816_v60, %v518_v39  ;;  %v645_v63 = vpop.f32.mrb[10].mxu1  ;;  %v818_v1 = vpop.f32.mrb[10].mxu0 }
 0x10b   : > { %v736_v2 = vadd.f32 %v699_v45, %v680_v57  ;;  %v869_v3 = vadd.f32 %v853_v58, %v699_v45  ;;  %v682_v4 = vadd.f32 %v645_v63, %v520_v41  ;;  %v855_v5 = vadd.f32 %v818_v1, %v520_v41  ;;  %v647_v6 = vpop.f32.mrb[11].mxu1  ;;  %v820_v7 = vpop.f32.mrb[11].mxu0 }
 0x10c   : > { %v737_v8 = vadd.f32 %v699_v45, %v681_v61  ;;  %v870_v9 = vadd.f32 %v854_v62, %v699_v45  ;;  %v683_v10 = vadd.f32 %v647_v6, %v522_v43  ;;  %v856_v11 = vadd.f32 %v820_v7, %v522_v43  ;;  %v714_v57 = vpop.permute.xlu1 %713  ;;  %v719_v1 = vpop.permute.xlu0 %718 }
 0x10d   : > { %v738_v12 = vadd.f32 %v704_v54, %v682_v4  ;;  %v871_v13 = vadd.f32 %v855_v5, %v704_v54  ;;  %v752_v17 = vmax.f32 %v736_v2, 0.0  ;;  %v885_v18 = vmax.f32 %v869_v3, 0.0 }
 0x10e   : > { %v739_v15 = vadd.f32 %v704_v54, %v683_v10  ;;  %v872_v16 = vadd.f32 %v856_v11, %v704_v54  ;;  %v753_v21 = vmax.f32 %v737_v8, 0.0  ;;  %v886_v22 = vmax.f32 %v870_v9, 0.0 }
 0x10f   : > { %v754_v19 = vmax.f32 %v738_v12, 0.0  ;;  %v887_v20 = vmax.f32 %v871_v13, 0.0 }
 0x110   : > { %v755_v23 = vmax.f32 %v739_v15, 0.0  ;;  %v888_v24 = vmax.f32 %v872_v16, 0.0  ;;  %v651_v25 = vpop.f32.mrb[12].mxu1  ;;  %v824_v26 = vpop.f32.mrb[12].mxu0 }
 0x111   : > { %v901_v27 = vpack.c.bf16 %v754_v19, %v752_v17  ;;  %v903_v28 = vpack.c.bf16 %v887_v20, %v885_v18  ;;  %v684_v29 = vadd.f32 %v651_v25, %v526_v46  ;;  %v857_v30 = vadd.f32 %v824_v26, %v526_v46  ;;  %v653_v31 = vpop.f32.mrb[13].mxu1  ;;  %v826_v32 = vpop.f32.mrb[13].mxu0 }
 0x112   : > { %v685_v33 = vadd.f32 %v653_v31, %v528_v48  ;;  %v858_v34 = vadd.f32 %v826_v32, %v528_v48  ;;  %v655_v35 = vpop.f32.mrb[14].mxu1  ;;  %v828_v36 = vpop.f32.mrb[14].mxu0  ;;  %v902_v37 = vpack.c.bf16 %v755_v23, %v753_v21  ;;  %v904_v39 = vpack.c.bf16 %v888_v24, %v886_v22 }
 0x113   : > { %v740_v41 = vadd.f32 %v709_v14, %v684_v29  ;;  %v873_v43 = vadd.f32 %v857_v30, %v709_v14  ;;  %v686_v45 = vadd.f32 %v655_v35, %v530_v50  ;;  %v859_v54 = vadd.f32 %v828_v36, %v530_v50  ;;  %v657_v55 = vpop.f32.mrb[15].mxu1  ;;  %v830_v56 = vpop.f32.mrb[15].mxu0 }
 0x114   : > { %v741_v58 = vadd.f32 %v709_v14, %v685_v33  ;;  %v874_v59 = vadd.f32 %v858_v34, %v709_v14  ;;  %v687_v60 = vadd.f32 %v657_v55, %v532_v52  ;;  %v860_v61 = vadd.f32 %v830_v56, %v532_v52  ;;  %990 = vmatprep.subr.bf16.mxu1 %v902_v37  ;;  %v729_v35 = vpop.permute.xlu0 %728 }
 0x115   : > { %v742_v46 = vadd.f32 %v714_v57, %v686_v45  ;;  %v875_v62 = vadd.f32 %v859_v54, %v714_v57  ;;  %1063 = vmatprep.subr.bf16.mxu0 %v904_v39  ;;  %991 = vmatpush1.bf16.msra.mxu1 %v901_v27  ;;  %v756_v2 = vmax.f32 %v740_v41, 0.0  ;;  %v889_v3 = vmax.f32 %v873_v43, 0.0 }
 0x116   : > { %v743_v48 = vadd.f32 %v714_v57, %v687_v60  ;;  %v876_v63 = vadd.f32 %v860_v61, %v714_v57  ;;  %1064 = vmatpush1.bf16.msra.mxu0 %v903_v28  ;;  %v757_v5 = vmax.f32 %v741_v58, 0.0  ;;  %v890_v6 = vmax.f32 %v874_v59, 0.0  ;;  %v724_v28 = vpop.permute.xlu1 %723 }
 0x117   : > { %v758_v4 = vmax.f32 %v742_v46, 0.0  ;;  %v891_v50 = vmax.f32 %v875_v62, 0.0 }
 0x118   : > { %v759_v7 = vmax.f32 %v743_v48, 0.0  ;;  %v892_v8 = vmax.f32 %v876_v63, 0.0  ;;  %v661_v9 = vpop.f32.mrb[16].mxu1  ;;  %v834_v10 = vpop.f32.mrb[16].mxu0 }
 0x119   : > { %v905_v52 = vpack.c.bf16 %v758_v4, %v756_v2  ;;  %v907_v11 = vpack.c.bf16 %v891_v50, %v889_v3  ;;  %v688_v12 = vadd.f32 %v661_v9, %v2011_v38  ;;  %v861_v13 = vadd.f32 %v834_v10, %v2011_v38  ;;  %v663_v14 = vpop.f32.mrb[17].mxu1  ;;  %v836_v15 = vpop.f32.mrb[17].mxu0 }
 0x11a   : > { %v689_v16 = vadd.f32 %v663_v14, %v2013_v40  ;;  %v862_v17 = vadd.f32 %v836_v15, %v2013_v40  ;;  %v665_v18 = vpop.f32.mrb[18].mxu1  ;;  %v838_v19 = vpop.f32.mrb[18].mxu0  ;;  %v906_v20 = vpack.c.bf16 %v759_v7, %v757_v5  ;;  %v908_v21 = vpack.c.bf16 %v892_v8, %v890_v6 }
 0x11b   : > { %v744_v22 = vadd.f32 %v719_v1, %v688_v12  ;;  %v877_v23 = vadd.f32 %v861_v13, %v719_v1  ;;  %v690_v24 = vadd.f32 %v665_v18, %v2015_v42  ;;  %v863_v25 = vadd.f32 %v838_v19, %v2015_v42  ;;  %v667_v26 = vpop.f32.mrb[19].mxu1  ;;  %v840_v27 = vpop.f32.mrb[19].mxu0 }
 0x11c   : > { %v745_v38 = vadd.f32 %v719_v1, %v689_v16  ;;  %v878_v29 = vadd.f32 %v862_v17, %v719_v1  ;;  %v691_v30 = vadd.f32 %v667_v26, %v2017_v44  ;;  %v864_v31 = vadd.f32 %v840_v27, %v2017_v44  ;;  %992 = vmatprep.subr.bf16.mxu1 %v906_v20  ;;  %v734_v8 = vpop.permute.xlu1 %733  ;;  %v1705_v26 = vld [vmem:[%s2181_s5 + $0x10] sm:$0xff]   ;;  %v1706_v27 = vld [vmem:[%s2181_s5 + $0x18] sm:$0xff]  }
 0x11d   : > { %v746_v40 = vadd.f32 %v724_v28, %v690_v24  ;;  %v879_v32 = vadd.f32 %v863_v25, %v724_v28  ;;  %1065 = vmatprep.subr.bf16.mxu0 %v908_v21  ;;  %993 = vmatpush1.bf16.msra.mxu1 %v905_v52  ;;  %v760_v36 = vmax.f32 %v744_v22, 0.0  ;;  %v893_v42 = vmax.f32 %v877_v23, 0.0  ;;  %v1703_v24 = vld [vmem:[%s2181_s5] sm:$0xff]   ;;  %v1704_v25 = vld [vmem:[%s2181_s5 + $0x8] sm:$0xff]  }
 0x11e   : > { %v747_v33 = vadd.f32 %v724_v28, %v691_v30  ;;  %v880_v34 = vadd.f32 %v864_v31, %v724_v28  ;;  %1066 = vmatpush1.bf16.msra.mxu0 %v907_v11  ;;  %v761_v41 = vmax.f32 %v745_v38, 0.0  ;;  %v894_v43 = vmax.f32 %v878_v29, 0.0 }
 0x11f   : > { %v762_v37 = vmax.f32 %v746_v40, 0.0  ;;  %v895_v39 = vmax.f32 %v879_v32, 0.0  ;;  %v410_v28 = vlaneseq  ;;  %v1807_v29 = vmov 0.0   ;;  %v1174_v32 = vpop.permute.xlu0 %1173 }
 0x120   : > { %v763_v45 = vmax.f32 %v747_v33, 0.0  ;;  %v896_v54 = vmax.f32 %v880_v34, 0.0  ;;  %v671_v55 = vpop.f32.mrb[20].mxu1  ;;  %v844_v56 = vpop.f32.mrb[20].mxu0 }
 0x121   : > { %v909_v44 = vpack.c.bf16 %v762_v37, %v760_v36  ;;  %v911_v57 = vpack.c.bf16 %v895_v39, %v893_v42  ;;  %v692_v58 = vadd.f32 %v671_v55, %v2019_v47  ;;  %v865_v59 = vadd.f32 %v844_v56, %v2019_v47  ;;  %v673_v60 = vpop.f32.mrb[21].mxu1  ;;  %v846_v61 = vpop.f32.mrb[21].mxu0 }
 0x122   : > { %v693_v46 = vadd.f32 %v673_v60, %v2021_v49  ;;  %v866_v62 = vadd.f32 %v846_v61, %v2021_v49  ;;  %v675_v48 = vpop.f32.mrb[22].mxu1  ;;  %v848_v63 = vpop.f32.mrb[22].mxu0  ;;  %v910_v1 = vpack.c.bf16 %v763_v45, %v761_v41  ;;  %v912_v2 = vpack.c.bf16 %v896_v54, %v894_v43 }
 0x123   : > { %v748_v3 = vadd.f32 %v729_v35, %v692_v58  ;;  %v881_v4 = vadd.f32 %v865_v59, %v729_v35  ;;  %v694_v50 = vadd.f32 %v675_v48, %v2023_v51  ;;  %v867_v5 = vadd.f32 %v848_v63, %v2023_v51  ;;  %v677_v6 = vpop.f32.mrb[23].mxu1  ;;  %v850_v7 = vpop.f32.mrb[23].mxu0 }
 0x124   : > { %v749_v47 = vadd.f32 %v729_v35, %v693_v46  ;;  %v882_v9 = vadd.f32 %v866_v62, %v729_v35  ;;  %v695_v10 = vadd.f32 %v677_v6, %v2025_v53  ;;  %v868_v52 = vadd.f32 %v850_v7, %v2025_v53  ;;  %994 = vmatprep.subr.bf16.mxu1 %v910_v1  ;;  %v927_v34 = vpop.permute.xlu0 %926 }
 0x125   : > { %v750_v49 = vadd.f32 %v734_v8, %v694_v50  ;;  %v883_v11 = vadd.f32 %v867_v5, %v734_v8  ;;  %1067 = vmatprep.subr.bf16.mxu0 %v912_v2  ;;  %995 = vmatpush1.bf16.msra.mxu1 %v909_v44  ;;  %v764_v14 = vmax.f32 %v748_v3, 0.0  ;;  %v897_v15 = vmax.f32 %v881_v4, 0.0 }
 0x126   : > { %v751_v12 = vadd.f32 %v734_v8, %v695_v10  ;;  %v884_v13 = vadd.f32 %v868_v52, %v734_v8  ;;  %1068 = vmatpush1.bf16.msra.mxu0 %v911_v57  ;;  %v765_v17 = vmax.f32 %v749_v47, 0.0  ;;  %v898_v18 = vmax.f32 %v882_v9, 0.0 }
 0x127   : > { %v766_v51 = vmax.f32 %v750_v49, 0.0  ;;  %v899_v16 = vmax.f32 %v883_v11, 0.0  ;;  %vm2070_vm4 = vcmp.lt.s32.totalorder %v410_v28, 256 }
 0x128   : > { %v767_v19 = vmax.f32 %v751_v12, 0.0  ;;  %v900_v20 = vmax.f32 %v884_v13, 0.0  ;;  %414 = vst.msk [vmem:[#allocation2] sm:$0x3] %vm2070_vm4, %v1807_v29  ;;  %415 = vst.msk [vmem:[#allocation3] sm:$0x3] %vm2070_vm4, %v1807_v29  ;;  %v939_v36 = vpop.permute.xlu0 %938 }
 0x129   : > { %v913_v21 = vpack.c.bf16 %v766_v51, %v764_v14  ;;  %v915_v22 = vpack.c.bf16 %v899_v16, %v897_v15 }
 0x12a   : > { %v914_v23 = vpack.c.bf16 %v767_v19, %v765_v17  ;;  %v916_v53 = vpack.c.bf16 %v900_v20, %v898_v18 }
 0x12c   : > { %996 = vmatprep.subr.bf16.mxu1 %v914_v23  ;;  %1069 = vmatprep.subr.bf16.mxu0 %v916_v53  ;;  %v2086_v9 = vpop.permute.xlu0 %946 }
 0x12d   : > { %997 = vmatpush1.bf16.msra.mxu1 %v913_v21  ;;  %1070 = vmatpush1.bf16.msra.mxu0 %v915_v22 }
 0x130   : > { %1599 = vmatmul.mubr.msk.bf16.vlgmr.msra.gmra.mrb[24].mxu1 %vm977_vm3, %v1703_v24  ;;  %1603 = vmatmul.mubr.msk.bf16.vlgmr.msra.gmra.mrb[24].mxu0 %vm977_vm3, %v1703_v24 }
 0x131   : > { %1032 = vmatprep.mubr.bf16.mxu1 %v1803_v0  ;;  %1105 = vmatprep.mubr.bf16.mxu0 %v1803_v0 }
 0x138   : > { %1600 = vmatmul.mubr.msk.bf16.gmra.mrb[28].mxu1 %vm977_vm3, %v1704_v25  ;;  %1604 = vmatmul.mubr.msk.bf16.gmra.mrb[28].mxu0 %vm977_vm3, %v1704_v25 }
 0x139   : > { %1042 = vmatprep.mubr.bf16.mxu1 %v1803_v0  ;;  %1115 = vmatprep.mubr.bf16.mxu0 %v1803_v0 }
 0x140   : > { %1601 = vmatmul.mubr.msk.bf16.gmra.mrb[32].mxu1 %vm977_vm3, %v1705_v26  ;;  %1605 = vmatmul.mubr.msk.bf16.gmra.mrb[32].mxu0 %vm977_vm3, %v1705_v26 }
 0x141   : > { %1052 = vmatprep.mubr.bf16.mxu1 %v1803_v0  ;;  %1125 = vmatprep.mubr.bf16.mxu0 %v1803_v0  ;;  %v931_v0 = vpop.permute.xlu1 %930 }
 0x145   : > { %v935_v30 = vpop.permute.xlu1 %934 }
 0x148   : > { %1602 = vmatmul.mubr.msk.bf16.gmra.mrb[36].mxu1 %vm977_vm3, %v1706_v27  ;;  %1606 = vmatmul.mubr.msk.bf16.gmra.mrb[36].mxu0 %vm977_vm3, %v1706_v27 }
 0x149   : > { %v1170_v31 = vpop.permute.xlu1 %1169 }
 0x14d   : > { %v2078_v40 = vpop.permute.xlu1 %942 }
 0x151   : > { %v2080_v33 = vpop.permute.xlu1 %1177 }
 0x155   : > { %v2082_v35 = vpop.permute.xlu1 %1181 }
 0x159   : > { %v2084_v47 = vpop.permute.xlu1 %950 }
 0x203   : > { %v1024_v42 = vpop.f32.mrb[24].mxu1  ;;  %v1097_v37 = vpop.f32.mrb[24].mxu0 }
 0x204   : > { %v1025_v39 = vadd.f32 %v1024_v42, %v927_v34  ;;  %v1098_v41 = vadd.f32 %v1097_v37, %v927_v34  ;;  %v1026_v43 = vpop.f32.mrb[25].mxu1  ;;  %v1099_v45 = vpop.f32.mrb[25].mxu0 }
 0x205   : > { %v1027_v54 = vadd.f32 %v1026_v43, %v927_v34  ;;  %v1100_v55 = vadd.f32 %v1099_v45, %v927_v34  ;;  %v1028_v56 = vpop.f32.mrb[26].mxu1  ;;  %v1101_v44 = vpop.f32.mrb[26].mxu0 }
 0x206   : > { %v1136_v57 = vmax.f32 %v1025_v39, 0.0  ;;  %v1138_v58 = vmax.f32 %v1098_v41, 0.0  ;;  %v1029_v59 = vadd.f32 %v1028_v56, %v931_v0  ;;  %v1102_v60 = vadd.f32 %v1101_v44, %v931_v0  ;;  %v1030_v61 = vpop.f32.mrb[27].mxu1  ;;  %v1103_v46 = vpop.f32.mrb[27].mxu0 }
 0x207   : > { %v1137_v62 = vmax.f32 %v1027_v54, 0.0  ;;  %v1139_v48 = vmax.f32 %v1100_v55, 0.0  ;;  %v1031_v63 = vadd.f32 %v1030_v61, %v931_v0  ;;  %v1104_v1 = vadd.f32 %v1103_v46, %v931_v0  ;;  %v2092_v56 = vpop.permute.xlu1 %954 }
 0x208   : > { %v1140_v2 = vmax.f32 %v1029_v59, 0.0  ;;  %v1142_v3 = vmax.f32 %v1102_v60, 0.0  ;;  %v1200_v5 = vmul.f32 %v1170_v31, %v1136_v57  ;;  %v1202_v6 = vmul.f32 %v1170_v31, %v1138_v58  ;;  %v1186_v59 = vpop.permute.xlu0 %1185 }
 0x209   : > { %v1141_v4 = vmax.f32 %v1031_v63, 0.0  ;;  %v1143_v50 = vmax.f32 %v1104_v1, 0.0  ;;  %v1201_v10 = vmul.f32 %v1170_v31, %v1137_v62  ;;  %v1203_v52 = vmul.f32 %v1170_v31, %v1139_v48 }
 0x20a   : > { %v1204_v7 = vmul.f32 %v1174_v32, %v1140_v2  ;;  %v1206_v8 = vmul.f32 %v1174_v32, %v1142_v3 }
 0x20b   : > { %v1205_v49 = vmul.f32 %v1174_v32, %v1141_v4  ;;  %v1207_v11 = vmul.f32 %v1174_v32, %v1143_v50  ;;  %v1034_v12 = vpop.f32.mrb[28].mxu1  ;;  %v1107_v13 = vpop.f32.mrb[28].mxu0 }
 0x20c   : > { %v1232_v14 = vadd.f32 %v1204_v7, %v1200_v5  ;;  %v1258_v15 = vadd.f32 %v1206_v8, %v1202_v6  ;;  %v1035_v51 = vadd.f32 %v1034_v12, %v935_v30  ;;  %v1108_v16 = vadd.f32 %v1107_v13, %v935_v30  ;;  %v1036_v17 = vpop.f32.mrb[29].mxu1  ;;  %v1109_v18 = vpop.f32.mrb[29].mxu0 }
 0x20d   : > { %v1245_v19 = vadd.f32 %v1205_v49, %v1201_v10  ;;  %v1271_v20 = vadd.f32 %v1207_v11, %v1203_v52  ;;  %v1037_v21 = vadd.f32 %v1036_v17, %v935_v30  ;;  %v1110_v22 = vadd.f32 %v1109_v18, %v935_v30  ;;  %v1038_v23 = vpop.f32.mrb[30].mxu1  ;;  %v1111_v53 = vpop.f32.mrb[30].mxu0 }
 0x20e   : > { %v1144_v24 = vmax.f32 %v1035_v51, 0.0  ;;  %v1146_v25 = vmax.f32 %v1108_v16, 0.0  ;;  %v1039_v26 = vadd.f32 %v1038_v23, %v939_v36  ;;  %v1112_v27 = vadd.f32 %v1111_v53, %v939_v36  ;;  %v1040_v29 = vpop.f32.mrb[31].mxu1  ;;  %v1113_v0 = vpop.f32.mrb[31].mxu0 }
 0x20f   : > { %v1145_v31 = vmax.f32 %v1037_v21, 0.0  ;;  %v1147_v32 = vmax.f32 %v1110_v22, 0.0  ;;  %v1041_v34 = vadd.f32 %v1040_v29, %v939_v36  ;;  %v1114_v42 = vadd.f32 %v1113_v0, %v939_v36  ;;  %v1190_v18 = vpop.permute.xlu1 %1189 }
 0x210   : > { %v1208_v37 = vmul.f32 %v2080_v33, %v1144_v24  ;;  %v1210_v39 = vmul.f32 %v2080_v33, %v1146_v25  ;;  %v1148_v41 = vmax.f32 %v1039_v26, 0.0  ;;  %v1150_v43 = vmax.f32 %v1112_v27, 0.0 }
 0x211   : > { %v1209_v30 = vmul.f32 %v2080_v33, %v1145_v31  ;;  %v1211_v45 = vmul.f32 %v2080_v33, %v1147_v32  ;;  %v1149_v54 = vmax.f32 %v1041_v34, 0.0  ;;  %v1151_v55 = vmax.f32 %v1114_v42, 0.0 }
 0x212   : > { %v1233_v44 = vadd.f32 %v1232_v14, %v1208_v37  ;;  %v1259_v57 = vadd.f32 %v1258_v15, %v1210_v39  ;;  %v1212_v58 = vmul.f32 %v2082_v35, %v1148_v41  ;;  %v1214_v36 = vmul.f32 %v2082_v35, %v1150_v43 }
 0x213   : > { %v1246_v60 = vadd.f32 %v1245_v19, %v1209_v30  ;;  %v1272_v61 = vadd.f32 %v1271_v20, %v1211_v45  ;;  %v1213_v46 = vmul.f32 %v2082_v35, %v1149_v54  ;;  %v1215_v62 = vmul.f32 %v2082_v35, %v1151_v55  ;;  %v1044_v48 = vpop.f32.mrb[32].mxu1  ;;  %v1117_v63 = vpop.f32.mrb[32].mxu0 }
 0x214   : > { %v1234_v33 = vadd.f32 %v1233_v44, %v1212_v58  ;;  %v1260_v1 = vadd.f32 %v1259_v57, %v1214_v36  ;;  %v1045_v2 = vadd.f32 %v1044_v48, %v2078_v40  ;;  %v1118_v3 = vadd.f32 %v1117_v63, %v2078_v40  ;;  %v1046_v4 = vpop.f32.mrb[33].mxu1  ;;  %v1119_v50 = vpop.f32.mrb[33].mxu0 }
 0x215   : > { %v1247_v5 = vadd.f32 %v1246_v60, %v1213_v46  ;;  %v1273_v6 = vadd.f32 %v1272_v61, %v1215_v62  ;;  %v1047_v7 = vadd.f32 %v1046_v4, %v2078_v40  ;;  %v1120_v8 = vadd.f32 %v1119_v50, %v2078_v40  ;;  %v1048_v10 = vpop.f32.mrb[34].mxu1  ;;  %v1121_v52 = vpop.f32.mrb[34].mxu0 }
 0x216   : > { %v1152_v49 = vmax.f32 %v1045_v2, 0.0  ;;  %v1154_v35 = vmax.f32 %v1118_v3, 0.0  ;;  %v1049_v11 = vadd.f32 %v1048_v10, %v2086_v9  ;;  %v1122_v12 = vadd.f32 %v1121_v52, %v2086_v9  ;;  %v1050_v13 = vpop.f32.mrb[35].mxu1  ;;  %v1123_v14 = vpop.f32.mrb[35].mxu0 }
 0x217   : > { %v1153_v15 = vmax.f32 %v1047_v7, 0.0  ;;  %v1155_v51 = vmax.f32 %v1120_v8, 0.0  ;;  %v1051_v16 = vadd.f32 %v1050_v13, %v2086_v9  ;;  %v1124_v17 = vadd.f32 %v1123_v14, %v2086_v9  ;;  %v1194_v3 = vpop.permute.xlu0 %1193  ;;  %v1198_v52 = vpop.permute.xlu1 %1197 }
 0x218   : > { %v1156_v19 = vmax.f32 %v1049_v11, 0.0  ;;  %v1158_v20 = vmax.f32 %v1122_v12, 0.0  ;;  %v1216_v40 = vmul.f32 %v1186_v59, %v1152_v49  ;;  %v1218_v21 = vmul.f32 %v1186_v59, %v1154_v35 }
 0x219   : > { %v1157_v22 = vmax.f32 %v1051_v16, 0.0  ;;  %v1159_v23 = vmax.f32 %v1124_v17, 0.0  ;;  %v1217_v53 = vmul.f32 %v1186_v59, %v1153_v15  ;;  %v1219_v24 = vmul.f32 %v1186_v59, %v1155_v51 }
 0x21a   : > { %v1235_v25 = vadd.f32 %v1234_v33, %v1216_v40  ;;  %v1261_v26 = vadd.f32 %v1260_v1, %v1218_v21  ;;  %v1220_v27 = vmul.f32 %v1190_v18, %v1156_v19  ;;  %v1222_v29 = vmul.f32 %v1190_v18, %v1158_v20 }
 0x21b   : > { %v1248_v0 = vadd.f32 %v1247_v5, %v1217_v53  ;;  %v1274_v31 = vadd.f32 %v1273_v6, %v1219_v24  ;;  %v1221_v32 = vmul.f32 %v1190_v18, %v1157_v22  ;;  %v1223_v34 = vmul.f32 %v1190_v18, %v1159_v23  ;;  %v1054_v42 = vpop.f32.mrb[36].mxu1  ;;  %v1127_v37 = vpop.f32.mrb[36].mxu0 }
 0x21c   : > { %v1236_v9 = vadd.f32 %v1235_v25, %v1220_v27  ;;  %v1262_v39 = vadd.f32 %v1261_v26, %v1222_v29  ;;  %v1055_v41 = vadd.f32 %v1054_v42, %v2084_v47  ;;  %v1128_v43 = vadd.f32 %v1127_v37, %v2084_v47  ;;  %v1056_v30 = vpop.f32.mrb[37].mxu1  ;;  %v1129_v45 = vpop.f32.mrb[37].mxu0 }
 0x21d   : > { %v1249_v54 = vadd.f32 %v1248_v0, %v1221_v32  ;;  %v1275_v55 = vadd.f32 %v1274_v31, %v1223_v34  ;;  %v1057_v44 = vadd.f32 %v1056_v30, %v2084_v47  ;;  %v1130_v57 = vadd.f32 %v1129_v45, %v2084_v47  ;;  %v1058_v58 = vpop.f32.mrb[38].mxu1  ;;  %v1131_v36 = vpop.f32.mrb[38].mxu0 }
 0x21e   : > { %v1160_v59 = vmax.f32 %v1055_v41, 0.0  ;;  %v1162_v60 = vmax.f32 %v1128_v43, 0.0  ;;  %v1059_v61 = vadd.f32 %v1058_v58, %v2092_v56  ;;  %v1132_v46 = vadd.f32 %v1131_v36, %v2092_v56  ;;  %v1060_v62 = vpop.f32.mrb[39].mxu1  ;;  %v1133_v48 = vpop.f32.mrb[39].mxu0 }
 0x21f   : > { %v1161_v63 = vmax.f32 %v1057_v44, 0.0  ;;  %v1163_v33 = vmax.f32 %v1130_v57, 0.0  ;;  %v1061_v1 = vadd.f32 %v1060_v62, %v2092_v56  ;;  %v1134_v2 = vadd.f32 %v1133_v48, %v2092_v56 }
 0x220   : > { %v1164_v4 = vmax.f32 %v1059_v61, 0.0  ;;  %v1166_v50 = vmax.f32 %v1132_v46, 0.0  ;;  %v1224_v47 = vmul.f32 %v1194_v3, %v1160_v59  ;;  %v1226_v5 = vmul.f32 %v1194_v3, %v1162_v60 }
 0x221   : > { %v1165_v6 = vmax.f32 %v1061_v1, 0.0  ;;  %v1167_v7 = vmax.f32 %v1134_v2, 0.0  ;;  %v1225_v8 = vmul.f32 %v1194_v3, %v1161_v63  ;;  %v1227_v10 = vmul.f32 %v1194_v3, %v1163_v33 }
 0x222   : > { %v1237_v49 = vadd.f32 %v1236_v9, %v1224_v47  ;;  %v1263_v35 = vadd.f32 %v1262_v39, %v1226_v5  ;;  %v1228_v11 = vmul.f32 %v1198_v52, %v1164_v4  ;;  %v1230_v12 = vmul.f32 %v1198_v52, %v1166_v50 }
 0x223   : > { %v1250_v13 = vadd.f32 %v1249_v54, %v1225_v8  ;;  %v1276_v14 = vadd.f32 %v1275_v55, %v1227_v10  ;;  %v1229_v15 = vmul.f32 %v1198_v52, %v1165_v6  ;;  %v1231_v51 = vmul.f32 %v1198_v52, %v1167_v7 }
 0x224   : > { %v1238_v16 = vadd.f32 %v1237_v49, %v1228_v11  ;;  %v1264_v56 = vadd.f32 %v1263_v35, %v1230_v12  ;;  %v1284_v9 = vstv %s424_s17  ;;  %v1808_v35 = vmov 1966171168  }
 0x225   : > { %v1251_v17 = vadd.f32 %v1250_v13, %v1229_v15  ;;  %v1277_v18 = vadd.f32 %v1276_v14, %v1231_v51  ;;  %v1345_v11 = vunpack.c.l.s4 %v1808_v35  ;;  %v1348_v14 = vshrl.u32 %v410_v28, 7  ;;  %v1365_v28 = vld [vmem:[#allocation3] sm:$0x3] }
 0x226   : > { %v1239_v19 = vrot.slane %v1238_v16, 4  ;;  %v1265_v20 = vrot.slane %v1264_v56, 4 }
 0x227   : > { %v1252_v40 = vrot.slane %v1251_v17, 4  ;;  %v1278_v21 = vrot.slane %v1277_v18, 4  ;;  %v1346_v13 = vunpack.c.0.s8 %v1345_v11 }
 0x228   : > { %v1240_v22 = vadd.f32 %v1239_v19, %v1238_v16  ;;  %v1266_v23 = vadd.f32 %v1265_v20, %v1264_v56 }
 0x229   : > { %v1253_v53 = vadd.f32 %v1252_v40, %v1251_v17  ;;  %v1279_v24 = vadd.f32 %v1278_v21, %v1277_v18 }
 0x22a   : > { %v1241_v25 = vrot.slane %v1240_v22, 2  ;;  %v1267_v26 = vrot.slane %v1266_v23, 2 }
 0x22b   : > { %v1254_v27 = vrot.slane %v1253_v53, 2  ;;  %v1280_v29 = vrot.slane %v1279_v24, 2 }
 0x22c   : > { %v1242_v0 = vadd.f32 %v1241_v25, %v1240_v22  ;;  %v1268_v31 = vadd.f32 %v1267_v26, %v1266_v23 }
 0x22d   : > { %v1255_v32 = vadd.f32 %v1254_v27, %v1253_v53  ;;  %v1281_v34 = vadd.f32 %v1280_v29, %v1279_v24  ;;  %v1349_v24 = vsub.s32 %v1346_v13, %v1348_v14 }
 0x22e   : > { %v1243_v42 = vrot.slane %v1242_v0, 1  ;;  %v1269_v37 = vrot.slane %v1268_v31, 1 }
 0x22f   : > { %v1256_v39 = vrot.slane %v1255_v32, 1  ;;  %v1282_v41 = vrot.slane %v1281_v34, 1 }
 0x230   : > { %v1244_v43 = vadd.f32 %v1243_v42, %v1242_v0  ;;  %v1270_v30 = vadd.f32 %v1269_v37, %v1268_v31 }
 0x231   : > { %v1257_v45 = vadd.f32 %v1256_v39, %v1255_v32  ;;  %v1283_v54 = vadd.f32 %v1282_v41, %v1281_v34  ;;  %v1340_v34 = vld [vmem:[#allocation2] sm:$0x3]  ;;  %v1393_v39 = vsub.s32 0, %v1348_v14  ;;  %v1397_v41 = vsub.s32 1, %v1348_v14 }
 0x232   : > { %v1285_v55 = vadd.f32 %v1284_v9, %v1244_v43  ;;  %v1287_v44 = vadd.f32 %v1284_v9, %v1270_v30 }
 0x233   : > { %v1286_v57 = vadd.f32 %v1284_v9, %v1257_v45  ;;  %v1288_v58 = vadd.f32 %v1284_v9, %v1283_v54 }
 0x234   : > { %v1298_v36 = vsub.f32 0.0, %v1285_v55  ;;  %v1322_v59 = vand.u32 2147483647, %v1287_v44  ;;  %v1320_v51 = vmax.f32 %v1287_v44, 0.0 }
 0x235   : > { %v1299_v60 = vsub.f32 0.0, %v1286_v57  ;;  %v1323_v61 = vand.u32 2147483647, %v1288_v58  ;;  %v1321_v17 = vmax.f32 %v1288_v58, 0.0 }
 0x236   : > { %v1302_v46 = vand.u32 2147483647, %v1298_v36  ;;  %v1324_v62 = vsub.f32 0.0, %v1322_v59  ;;  %v1300_v20 = vmax.f32 %v1298_v36, 0.0 }
 0x237   : > { %v1303_v48 = vand.u32 2147483647, %v1299_v60  ;;  %v1325_v63 = vsub.f32 0.0, %v1323_v61  ;;  %v1301_v22 = vmax.f32 %v1299_v60, 0.0 }
 0x238   : > { %v1304_v33 = vsub.f32 0.0, %v1302_v46  ;;  %v1326_v1 = vmul.f32 1.442695, %v1324_v62 }
 0x239   : > { %v1305_v2 = vsub.f32 0.0, %v1303_v48  ;;  %v1328_v3 = vmul.f32 1.442695, %v1325_v63 }
 0x23a   : > { %v1306_v4 = vmul.f32 1.442695, %v1304_v33  ;;  %1707 = vpow2.f32 %v1326_v1 }
 0x23b   : > { %v1308_v50 = vmul.f32 1.442695, %v1305_v2  ;;  %1709 = vpow2.f32 %v1328_v3 }
 0x23c   : > { %1711 = vpow2.f32 %v1306_v4 }
 0x23d   : > { %1713 = vpow2.f32 %v1308_v50 }
 0x244   : > { %v1708_v47 = vpop.eup %1707 }
 0x245   : > { %v1710_v5 = vpop.eup %1709  ;;  %v1330_v6 = vadd.f32 1.0, %v1708_v47 }
 0x246   : > { %v1712_v7 = vpop.eup %1711  ;;  %v1331_v8 = vadd.f32 1.0, %v1710_v5 }
 0x247   : > { %v1714_v10 = vpop.eup %1713  ;;  %v1310_v52 = vadd.f32 1.0, %v1712_v7  ;;  %1715 = vlog2.f32 %v1330_v6 }
 0x248   : > { %v1311_v49 = vadd.f32 1.0, %v1714_v10  ;;  %1717 = vlog2.f32 %v1331_v8 }
 0x249   : > { %1719 = vlog2.f32 %v1310_v52 }
 0x24a   : > { %1721 = vlog2.f32 %v1311_v49 }
 0x251   : > { %v1716_v12 = vpop.eup %1715 }
 0x252   : > { %v1718_v15 = vpop.eup %1717  ;;  %v1333_v16 = vmul.f32 0.6931472, %v1716_v12 }
 0x253   : > { %v1720_v56 = vpop.eup %1719  ;;  %v1335_v18 = vmul.f32 0.6931472, %v1718_v15 }
 0x254   : > { %v1722_v19 = vpop.eup %1721  ;;  %v1313_v40 = vmul.f32 0.6931472, %v1720_v56  ;;  %v1336_v21 = vadd.f32 %v1333_v16, %v1320_v51 }
 0x255   : > { %v1315_v23 = vmul.f32 0.6931472, %v1722_v19  ;;  %v1337_v53 = vadd.f32 %v1335_v18, %v1321_v17 }
 0x256   : > { %v1316_v25 = vadd.f32 %v1313_v40, %v1300_v20 }
 0x257   : > { %v1317_v26 = vadd.f32 %v1315_v23, %v1301_v22  ;;  %v1368_v27 = vcombine.low %v1336_v21, %v1337_v53 }
 0x259   : > { %v1343_v29 = vcombine.low %v1316_v25, %v1317_v26  ;;  %v1375_v0 = vrot.slane %v1368_v27, %v1349_v24 }
 0x25b   : > { %v1382_v31 = vrot.slane %v1375_v0, %v1349_v24  ;;  %v1350_v32 = vrot.slane %v1343_v29, %v1349_v24 }
 0x25d   : > { %v1384_v42 = vadd.f32 %v1382_v31, %v1365_v28  ;;  %v1357_v37 = vrot.slane %v1350_v32, %v1349_v24 }
 0x25f   : > { %1385 = vst.msk [vmem:[#allocation3] sm:$0x3] %vm2070_vm4, %v1384_v42  ;;  %v1359_v9 = vadd.f32 %v1357_v37, %v1340_v34 }
 0x261   : > { %1364 = vst.msk [vmem:[#allocation2] sm:$0x3] %vm2070_vm4, %v1359_v9 }
 0x266   : > { %v1407_v43 = vld [vmem:[#allocation3] sm:$0x3] }
 0x267   : > { %v1412_v30 = vrot.slane %v1407_v43, %v1393_v39  ;;  %v1416_v45 = vrot.slane %v1407_v43, %v1397_v41 }
 0x268   : > { %v1389_v54 = vld [vmem:[#allocation2] sm:$0x3] }
 0x269   : > { %v1419_v55 = vsel %vm1401_vm5, %v1412_v30, 0.0  ;;  %v1420_v44 = vsel %vm1401_vm5, %v1416_v45, 0.0  ;;  %v1394_v57 = vrot.slane %v1389_v54, %v1393_v39  ;;  %v1398_v58 = vrot.slane %v1389_v54, %v1397_v41 }
 0x26a   : > { %v1421_v36 = vadd.f32 %v1420_v44, %v1419_v55 }
 0x26b   : > { %v1402_v59 = vsel %vm1401_vm5, %v1394_v57, 0.0  ;;  %v1403_v38 = vsel %vm1401_vm5, %v1398_v58, 0.0 }
 0x26c   : > { %1422 = vadd.xlane.f32.xlu0 %v1421_v36  ;;  %v1404_v60 = vadd.f32 %v1403_v38, %v1402_v59 }
 0x26e   : > { %1405 = vadd.xlane.f32.xlu1 %v1404_v60 }
 0x2f9   : > { %v1423_v61 = vpop.xlane.xlu0 %1422 }
 0x2fa   : > { %v1425_v46 = vrot.slane %v1423_v61, 7 }
 0x2fb   : > { %v1406_v62 = vpop.xlane.xlu1 %1405 }
 0x2fc   : > { %v1427_v48 = vsel %vm1401_vm5, %v1406_v62, %v1425_v46 }
 0x2fd   : > { %1430 = vperm.xlu0 %1688, %v1427_v48  }
 0x37c   : > { %v1431_v63 = vpop.permute.xlu0 %1430 }
 0x37d   : > { %1433 = vst [vmem:[%s374_s21] sm:$0x3] %v1431_v63 }
 0x37e   : > { %1736 = shalt.err (!%p1733_p5)
}
 0x37f   : > { %s1737_s17 = scalar_lea.hbm %s2131_s27, 32  ;;  %s1741_s21 = scalar_lea.hbm %s2184_s8, 64 }
 0x380   : > { %p1738_p6 = scmp.ne.s32.totalorder %s2131_s27, %s1737_s17  ;;  %p1742_p10 = scmp.lt.u32.totalorder %s2131_s27, %s2184_s8 }
 0x381   : > { %p1743_p11 = scmp.lt.u32.totalorder %s1741_s21, %s1737_s17  ;;  %p1745_p13 = scmp.lt.u32.totalorder %s1737_s17, %s2131_s27 }
 0x382   : > { %p1739_p7 = pnand %p1738_p6, %p1898_p4 }
 0x383   : > { %p1744_p12 = por %p1743_p11, %p1742_p10 }
 0x384   : > { %p1740_p9 = pneg %p1739_p7 }
 0x385   : > { %p1746_p0 = por %p1745_p13, %p1744_p12 }
 0x387   : > { %p1747_p1 = pnand %p1746_p0, %p1740_p9 }
 0x389   : > { %1750 = shalt.err (!%p1747_p1)
}
 0x38a   : > { %1616 = dma.vmem_to_hbm [thread:$0]  (%p1898_p4), %s2126_s23, 32, %s2131_s27, %s1435_s28  }
 0x38b PF: > { %p1622_p2 = scmp.ge.s32.totalorder %s1801_s12, 2  ;;  %s1460_s26 = sand.u32 1, %s1781_s29  }
 0x38c   : > { %s1461_s7 = scalar_lea.sflag [#allocation6], %s1460_s26 }
 0x38d   : > { %p1619_p3 = pnand %p1622_p2, %p1905_p8 }
 0x38f   : > { %1776 = dma.done.wait (!%p1619_p3), %s1461_s7, 32  }
 0x390   : > { %1778 = vsyncadd (!%p1619_p3), %s1461_s7, 4294967264  ;;  %s22_s12 = sadd.s32 1, %s1801_s12   ;;  %s2189_s29 = smov %s1785_s30 }
 0x391   : > { %p19_p5 = scmp.ge.s32.totalorder %s22_s12, 4   ;;  %s2190_s30 = smov %s1789_s9 }
 0x392   : > { %s2191_s9 = smov %s1911_s19  ;;  %s2192_s10 = smov %s1797_s11 }
 0x393   : > { %s2193_s11 = smov %s2195_s14  ;;  %21 = sbr.rel (!%p19_p5) target bundleno = 6 (0x6), region = 101 }
 0x39a   :  { %1466 = vsyncpa [#allocation6], 1 }
 0x39b   :  { %1468 = vsyncpa [#allocation6 + $0x1], 1 }

</bundles_post_ra>
